<compile_context>
chip_gen: v7x
topology: tpu7x:2x2x1
jax: 0.10.0
libtpu: 0.0.40
codegen_flags: <defaults>
</compile_context>

<pallas_src>
import jax
import jax.numpy as jnp
from jax import lax
from jax.experimental import pallas as pl
from jax.experimental.pallas import tpu as pltpu

_LANE_WIDTH = 1024            # fallback lane-dense slab width (multiple of 128)
_TARGET_TILE_BYTES = 4 << 20  # ~4 MiB streamed input tile (good on v5e/v6e/v7x)
_FUSED_MAX_BYTES = 6 << 20    # single-pass (whole slab in VMEM) threshold
_VMEM_LIMIT_BYTES = 48 << 20  # > 16/32 MiB scoped defaults, < 64 MiB v7x physical
_NUM_CORE_SPLIT = 2           # pass-1 split for v7x megacore; harmless on 1-TC chips


# ----------------------------------------------------------------------------
# Kernels
# ----------------------------------------------------------------------------
def _make_fused_kernel(inv_n, out_dtype):
    """Single pass: whole slab in VMEM -> sum -> subtract -> store."""
    def kernel(x_ref, o_ref):
        xf = x_ref[...].astype(jnp.float32)
        mean = jnp.sum(xf) * inv_n            # padded zeros (if any) add nothing
        o_ref[...] = (xf - mean).astype(out_dtype)
    return kernel


def _make_sum_kernel(n_tiles, tiles_per_core, tm, w, ragged_rows):
    """Pass 1: per-core partial sums of a (rows, w) slab.

    acc is a per-lane (1, w) f32 accumulator (vector adds only in steady state).
    The final (8, w) output block holds the (1, w) partial replicated across the
    8 sublanes; pass 2 divides by 8 (exact power of two) when forming the mean.
    """
    has_ragged = ragged_rows < tm
    n_full = n_tiles - 1 if has_ragged else n_tiles

    def kernel(x_ref, out_ref, acc_ref):
        c = pl.program_id(0)
        i = pl.program_id(1)
        t = c * tiles_per_core + i            # global tile index for this step

        @pl.when(i == 0)
        def _init():
            acc_ref[...] = jnp.zeros_like(acc_ref)

        @pl.when(t < n_full)
        def _full_tile():
            acc_ref[...] += jnp.sum(x_ref[...].astype(jnp.float32),
                                    axis=0, keepdims=True)

        if has_ragged:
            # Last tile extends past the array; mask the garbage rows in-kernel
            # instead of padding the array in HBM.
            @pl.when(t == n_tiles - 1)
            def _ragged_tile():
                rid = lax.broadcasted_iota(jnp.int32, (tm, w), 0)
                xm = jnp.where(rid < ragged_rows,
                               x_ref[...].astype(jnp.float32), 0.0)
                acc_ref[...] += jnp.sum(xm, axis=0, keepdims=True)

        # Clamped overflow steps (t >= n_tiles, odd tile counts) skip all of the
        # accumulation branches above.

        @pl.when(i == pl.num_programs(1) - 1)
        def _emit():
            out_ref[...] = jnp.broadcast_to(acc_ref[...], (8, w))
    return kernel


def _make_sub_kernel(inv_n_over_rep, out_dtype):
    """Pass 2: o = x - mean. mean is derived in-kernel from the pass-1 partials
    (sum of the replicated (n_split*8, w) block, scaled by 1/(8*n))."""
    def kernel(p_ref, x_ref, o_ref):
        mean = jnp.sum(p_ref[...]) * inv_n_over_rep     # f32 scalar
        o_ref[...] = (x_ref[...].astype(jnp.float32) - mean).astype(out_dtype)
    return kernel


# ----------------------------------------------------------------------------
# Wrapper
# ----------------------------------------------------------------------------
def _lane_width(n):
    for w in (1024, 512, 256, 128):
        if n % w == 0:
            return w
    return None


def _sublane_align(dtype):
    # 8 for 32-bit, 16 for 16-bit, 32 for 8-bit dtypes (native sublane packing).
    return max(8, 32 // jnp.dtype(dtype).itemsize)


def _centered_two_pass(x2, inv_n, tile_bytes):
    rows, w = x2.shape
    dtype = x2.dtype
    itemsize = jnp.dtype(dtype).itemsize
    align = _sublane_align(dtype)

    row_bytes = w * itemsize
    tm = max(align, (tile_bytes // row_bytes) // align * align)
    tm = min(tm, rows)                       # full-extent block is always legal
    n_tiles = pl.cdiv(rows, tm)
    ragged_rows = rows - (n_tiles - 1) * tm  # valid rows in the last tile

    n_split = _NUM_CORE_SPLIT if n_tiles >= 2 else 1
    tpc = pl.cdiv(n_tiles, n_split)          # tiles handled per core

    # ---- Pass 1: per-core (8, w) partial sums (f32) --------------------------
    partials = pl.pallas_call(
        _make_sum_kernel(n_tiles, tpc, tm, w, ragged_rows),
        out_shape=jax.ShapeDtypeStruct((n_split * 8, w), jnp.float32),
        grid=(n_split, tpc),
        in_specs=[pl.BlockSpec(
            (tm, w), lambda c, i: (jnp.minimum(c * tpc + i, n_tiles - 1), 0))],
        out_specs=pl.BlockSpec((8, w), lambda c, i: (c, 0)),
        scratch_shapes=[pltpu.VMEM((1, w), jnp.float32)],
        compiler_params=pltpu.CompilerParams(
            dimension_semantics=("parallel", "arbitrary"),
            vmem_limit_bytes=_VMEM_LIMIT_BYTES),
        cost_estimate=pl.CostEstimate(
            flops=x2.size, transcendentals=0,
            bytes_accessed=x2.size * itemsize),
    )(x2)

    # ---- Pass 2: streamed x - mean (mean folded in-kernel) -------------------
    y2 = pl.pallas_call(
        _make_sub_kernel(inv_n / 8.0, dtype),
        out_shape=jax.ShapeDtypeStruct((rows, w), dtype),
        grid=(n_tiles,),
        in_specs=[
            pl.BlockSpec((n_split * 8, w), lambda i: (0, 0)),  # resident partials
            pl.BlockSpec((tm, w), lambda i: (i, 0)),
        ],
        out_specs=pl.BlockSpec((tm, w), lambda i: (i, 0)),
        compiler_params=pltpu.CompilerParams(
            dimension_semantics=("parallel",),
            vmem_limit_bytes=_VMEM_LIMIT_BYTES),
        cost_estimate=pl.CostEstimate(
            flops=2 * x2.size, transcendentals=0,
            bytes_accessed=2 * x2.size * itemsize),
    )(partials, x2)
    return y2


def centered_layer(x, *, force_two_pass=False, tile_bytes=_TARGET_TILE_BYTES):
    """X - X.mean() over all elements (torch CenteredLayer forward)."""
    if x.size == 0:
        return x
    orig_shape = x.shape
    dtype = x.dtype
    n = int(x.size)
    itemsize = jnp.dtype(dtype).itemsize

    # Lane-dense 2-D view.  For sizes divisible by 128 this is a free reshape
    # (no extra HBM pass).  Only genuinely awkward sizes take the padded path.
    flat = x.reshape(-1)
    w = _lane_width(n)
    padded = w is None
    if padded:
        # TODO(synk): could avoid this copy with in-kernel tail masking on a 1-D view.
        w = _LANE_WIDTH
        pad = pl.cdiv(n, w) * w - n
        flat = jnp.pad(flat, (0, pad))
    x2 = flat.reshape(-1, w)

    inv_n = 1.0 / n
    view_bytes = x2.size * itemsize

    if view_bytes <= _FUSED_MAX_BYTES and not force_two_pass:
        # Whole slab fits in VMEM: one read + one write of HBM (2N traffic).
        y2 = pl.pallas_call(
            _make_fused_kernel(inv_n, dtype),
            out_shape=jax.ShapeDtypeStruct(x2.shape, dtype),
            compiler_params=pltpu.CompilerParams(
                vmem_limit_bytes=_VMEM_LIMIT_BYTES),
        )(x2)
    else:
        y2 = _centered_two_pass(x2, inv_n, tile_bytes)

    if padded:
        return y2.reshape(-1)[:n].reshape(orig_shape)
    return y2.reshape(orig_shape)


# jit so reshapes + both passes dispatch as a single program.
centered = jax.jit(centered_layer, static_argnames=("force_two_pass", "tile_bytes"))


# ----------------------------------------------------------------------------
# Self-test
# ----------------------------------------------------------------------------
if __name__ == "__main__":
    key = jax.random.PRNGKey(0)
    k1, k2, k3, k4, k5 = jax.random.split(key, 5)

    def ref_centered(x):
        xf = x.astype(jnp.float32)
        return (xf - jnp.mean(xf)).astype(x.dtype)

    cases = []

    # 1) Typical small 4-D input -> fused single-pass path.
    x1 = jax.random.normal(k1, (2, 4, 16, 16), dtype=jnp.float32)
    cases.append((centered(x1), x1, 1e-5))

    # 2) Forced two-pass: ragged last tile + 2-way core-split grid.
    x2 = jax.random.normal(k2, (52, 256), dtype=jnp.float32)
    cases.append((centered(x2, force_two_pass=True, tile_bytes=16 * 1024), x2, 1e-5))

    # 3) Size not divisible by 128 -> padded lane-dense fallback.
    x3 = jax.random.normal(k3, (37, 50), dtype=jnp.float32)
    cases.append((centered(x3, force_two_pass=True, tile_bytes=16 * 1024), x3, 1e-5))

    # 4) bf16: dtype-aware sublane alignment (tm multiple of 16) + ragged tail.
    x4 = jax.random.normal(k4, (80, 512), dtype=jnp.bfloat16)
    cases.append((centered(x4, force_two_pass=True, tile_bytes=32 * 1024), x4, 5e-2))

    # 5) Default dispatch at a streaming size (two-pass, 4 MiB tiles).
    x5 = jax.random.normal(k5, (2048, 1024), dtype=jnp.float32)
    cases.append((centered(x5), x5, 1e-5))

    for y, x, tol in cases:
        y = jax.block_until_ready(y)
        assert y.shape == x.shape and y.dtype == x.dtype
        y_ref = ref_centered(x)
        assert jnp.allclose(y.astype(jnp.float32), y_ref.astype(jnp.float32),
                            atol=tol, rtol=tol), (
            f"mismatch vs reference at shape {x.shape} dtype {x.dtype}")

    # Centered output should have ~zero mean (f32 cases).
    assert abs(float(jnp.mean(cases[0][0]))) < 1e-4
    assert abs(float(jnp.mean(cases[-1][0]))) < 1e-4

    print("KERNEL_OK")
</pallas_src>

<mosaic_0001>
module attributes {stable_mosaic.version = 11 : i64} {
  func.func @kernel(%arg0: memref<2x1024xf32, #tpu.memory_space<vmem>>, %arg1: memref<2x1024xf32, #tpu.memory_space<vmem>>) attributes {dimension_semantics = [], scalar_prefetch = 0 : i64, scratch_operands = 0 : i64, tpu.core_type = #tpu.core_type<tc>} {
    %c0 = arith.constant 0 : index
    %c0_0 = arith.constant 0 : index
    %0 = vector.load %arg0[%c0, %c0_0] : memref<2x1024xf32, #tpu.memory_space<vmem>>, vector<2x1024xf32>
    %1 = vector.shape_cast %0 : vector<2x1024xf32> to vector<1x2x1024xf32>
    %cst = arith.constant dense<0.000000e+00> : vector<1xf32>
    %2 = vector.multi_reduction <add>, %1, %cst [1, 2] : vector<1x2x1024xf32> to vector<1xf32>
    %3 = vector.shape_cast %2 : vector<1xf32> to vector<1x1x1xf32>
    %4 = vector.extract %3[0, 0, 0] : f32 from vector<1x1x1xf32>
    %cst_1 = arith.constant 4.8828125E-4 : f32
    %5 = arith.mulf %4, %cst_1 : f32
    %6 = vector.broadcast %5 : f32 to vector<2x1024xf32>
    %7 = arith.subf %0, %6 : vector<2x1024xf32>
    %c0_2 = arith.constant 0 : index
    %c0_3 = arith.constant 0 : index
    %8 = vector.load %arg1[%c0_2, %c0_3] : memref<2x1024xf32, #tpu.memory_space<vmem>>, vector<2x1024xf32>
    tpu.vector_store %arg1[%c0_2, %c0_3], %7 {strides = array<i32>} : memref<2x1024xf32, #tpu.memory_space<vmem>>, vector<2x1024xf32>,
    return
  }
}

</mosaic_0001>

<bundles_post_ra>
// kernel: centered_layer.1
= control target key start
LH: loop header
LB: loop body
LE: loop exit
PB: predicated region body
PF: predicated region fallthrough
CT: control target
= control target key end

     0   :  { %v16_v0 = vlaneseq  ;;  %v94_v1 = vmov 1983009808   ;;  %vm54_vm0 = vcmask 1041408   ;;  %s125_s0 = inlined_call_operand.vmem [shape: f32[2,1024], index: 0, kind: input, shape index: {}]   ;;  %s126_s1 = inlined_call_operand.vmem [shape: f32[2,1024], index: 1, kind: output, shape index: {}]  }
   0x1   :  { %v14_v2 = vunpack.c.l.s4 %v94_v1  ;;  %v8_v3 = vld [vmem:[%s125_s0] sm:$0xff]  ;;  %v9_v8 = vld [vmem:[%s125_s0 + $0x8] sm:$0xff] }
   0x2   :  { %v17_v4 = vshrl.u32 %v16_v0, 7  ;;  %v12_v5 = vcombine.high %v8_v3, %v8_v3  ;;  %v29_v13 = vcombine.high %v9_v8, %v9_v8 }
   0x3   :  { %v15_v6 = vunpack.c.0.s8 %v14_v2 }
   0x5   :  { %v18_v7 = vsub.s32 %v15_v6, %v17_v4 }
   0x7   :  { %v19_v9 = vrot.slane %v8_v3, %v18_v7  ;;  %v26_v10 = vrot.slane %v12_v5, %v18_v7  ;;  %v36_v14 = vrot.slane %v9_v8, %v18_v7  ;;  %v43_v19 = vrot.slane %v29_v13, %v18_v7 }
   0x9   :  { %v27_v11 = vcombine.high %v19_v9, %v19_v9  ;;  %v28_v12 = vcombine.high %v26_v10, %v26_v10  ;;  %v55_v15 = vsel %vm54_vm0, %v19_v9, 0.0  ;;  %v58_v17 = vsel %vm54_vm0, %v26_v10, 0.0 }
   0xa   :  { %v44_v20 = vcombine.high %v36_v14, %v36_v14  ;;  %v62_v23 = vsel %vm54_vm0, %v36_v14, 0.0  ;;  %v45_v25 = vcombine.high %v43_v19, %v43_v19  ;;  %v66_v28 = vsel %vm54_vm0, %v43_v19, 0.0 }
   0xb   :  { %v56_v16 = vsel %vm54_vm0, %v27_v11, 0.0  ;;  %v60_v21 = vsel %vm54_vm0, %v28_v12, 0.0 }
   0xc   :  { %v57_v18 = vadd.f32 %v56_v16, %v55_v15  ;;  %v64_v26 = vsel %vm54_vm0, %v44_v20, 0.0  ;;  %v68_v30 = vsel %vm54_vm0, %v45_v25, 0.0 }
   0xe   :  { %v59_v22 = vadd.f32 %v58_v17, %v57_v18 }
  0x10   :  { %v61_v24 = vadd.f32 %v60_v21, %v59_v22 }
  0x12   :  { %v63_v27 = vadd.f32 %v62_v23, %v61_v24 }
  0x14   :  { %v65_v29 = vadd.f32 %v64_v26, %v63_v27 }
  0x16   :  { %v67_v31 = vadd.f32 %v66_v28, %v65_v29 }
  0x18   :  { %v69_v32 = vadd.f32 %v68_v30, %v67_v31 }
  0x1a   :  { %70 = vadd.xlane.f32.xlu0 %v69_v32 }
  0xa7   :  { %v71_v33 = vpop.xlane.xlu0 %70 }
  0xa8   :  { %v72_v34 = vrot.slane %v71_v33, 4 }
  0xaa   :  { %v73_v35 = vadd.f32 %v72_v34, %v71_v33 }
  0xac   :  { %v74_v36 = vrot.slane %v73_v35, 2 }
  0xae   :  { %v75_v37 = vadd.f32 %v74_v36, %v73_v35 }
  0xb0   :  { %v76_v38 = vrot.slane %v75_v37, 1 }
  0xb2   :  { %v77_v39 = vadd.f32 %v76_v38, %v75_v37 }
  0xb4   :  { %89 = vpush %v77_v39 }
  0xe5   :  { %s90_s0 = spop %89 }
  0xe6   :  { %s79_s10 = smul.f32 0.00048828125, %s90_s0 }
  0xe8   :  { %v80_v40 = vstv %s79_s10 }
  0xe9   :  { %v81_v41 = vsub.f32 %v8_v3, %v80_v40  ;;  %v82_v42 = vsub.f32 %v9_v8, %v80_v40 }
  0xeb   :  { %83 = vst [vmem:[%s126_s1] sm:$0xff] %v81_v41  ;;  %84 = vst [vmem:[%s126_s1 + $0x8] sm:$0xff] %v82_v42 }

</bundles_post_ra>
